<compile_context>
chip_gen: v7x
topology: tpu7x:2x2x1
jax: 0.10.0
libtpu: 0.0.40
codegen_flags: <defaults>
</compile_context>

<pallas_src>
import math
import functools

import jax
import jax.numpy as jnp
from jax import lax
from jax.experimental import pallas as pl
from jax.experimental.pallas import tpu as pltpu


def _pick_tile(dim, candidates):
    """Largest candidate that evenly divides `dim`, else the full dim (always legal)."""
    for t in candidates:
        if dim % t == 0:
            return t
    return dim


@functools.lru_cache(maxsize=None)
def _vmem_limit_bytes():
    """Generation-aware scoped-VMEM limit (~60% of physical); None -> compiler default."""
    try:
        cap = getattr(pltpu.get_tpu_info(), "vmem_capacity_bytes", None)
        if cap:
            return int(0.6 * int(cap))
    except Exception:
        pass
    return None


# ----------------------------------------------------------------------------
# Kernel 1: tiled dense projection  y = x @ Wt + b
#           (Wt already in (d_in, d_out) layout; weights preprocessed at init)
# ----------------------------------------------------------------------------
def _linear_kernel(x_ref, w_ref, b_ref, o_ref, acc_ref):
    # x: (tm, tk) bf16   w: (tk, tn) bf16   b: (1, tn) f32   acc: (tm, tn) f32
    @pl.when(pl.program_id(2) == 0)
    def _():
        acc_ref[...] = jnp.zeros_like(acc_ref)

    acc_ref[...] += jnp.dot(x_ref[...], w_ref[...],
                            preferred_element_type=jnp.float32)

    @pl.when(pl.program_id(2) == pl.num_programs(2) - 1)
    def _():
        o_ref[...] = (acc_ref[...] + b_ref[...]).astype(o_ref.dtype)


def linear(x2d, wt, b, out_dtype=None):
    """y = x2d @ wt + b  with wt already (d_in, d_out)."""
    n, d_in = x2d.shape
    d_out = wt.shape[1]
    out_dtype = out_dtype or x2d.dtype

    tm = _pick_tile(n, (256, 128, 64, 32, 16, 8))
    tn = _pick_tile(d_out, (256, 128))
    # Let tk grow to the full contraction dim when it divides (bf16 tiles are small),
    # collapsing the K grid axis and the per-step accumulator read-modify-write.
    tk = _pick_tile(d_in, (4096, 2048, 1024, 512, 256, 128))
    grid = (n // tm, d_out // tn, d_in // tk)

    return pl.pallas_call(
        _linear_kernel,
        out_shape=jax.ShapeDtypeStruct((n, d_out), out_dtype),
        grid=grid,
        in_specs=[
            pl.BlockSpec((tm, tk), lambda i, j, k: (i, k)),
            pl.BlockSpec((tk, tn), lambda i, j, k: (k, j)),
            pl.BlockSpec((1, tn), lambda i, j, k: (0, j)),
        ],
        out_specs=pl.BlockSpec((tm, tn), lambda i, j, k: (i, j)),
        scratch_shapes=[pltpu.VMEM((tm, tn), jnp.float32)],
        compiler_params=pltpu.CompilerParams(
            dimension_semantics=("parallel", "parallel", "arbitrary"),
            vmem_limit_bytes=_vmem_limit_bytes(),
        ),
    )(x2d, wt, b.reshape(1, d_out))


# ----------------------------------------------------------------------------
# Kernel 2: flash-style scaled dot-product attention over all heads of one
#           (batch, q-tile) step, streaming K/V over a KV grid axis.
#           Heads are lane slices of the (B, S, d_model) activations; the output
#           is a single lane-dense (tq, d_model) store from the f32 accumulator.
# ----------------------------------------------------------------------------
def _flash_attn_kernel(q_ref, k_ref, v_ref, m_ref, o_ref,
                       m_sc, l_sc, acc_sc, *, num_heads, d_k):
    kv = pl.program_id(2)

    @pl.when(kv == 0)
    def _():
        m_sc[...] = jnp.full(m_sc.shape, -jnp.inf, m_sc.dtype)
        l_sc[...] = jnp.zeros(l_sc.shape, l_sc.dtype)
        acc_sc[...] = jnp.zeros(acc_sc.shape, acc_sc.dtype)

    scale = 1.0 / math.sqrt(d_k)
    q = q_ref[0] * scale          # (tq, d_model), stays bf16; scale folded on small q tile
    k = k_ref[0]                  # (tkv, d_model) bf16
    v = v_ref[0]                  # (tkv, d_model) bf16
    tq, tkv = q.shape[0], k.shape[0]

    # Hoist the mask broadcast out of the unrolled head loop (no CSE of broadcasts).
    mask_b = jnp.broadcast_to(m_ref[0].astype(jnp.float32), (tq, tkv))

    for h in range(num_heads):    # static unroll over heads (lane slices of d_model)
        sl = slice(h * d_k, (h + 1) * d_k)
        qh, kh, vh = q[:, sl], k[:, sl], v[:, sl]

        # bf16 operands -> MXU, f32 scores; contract last dims (no k.T relayout).
        s = lax.dot_general(qh, kh, (((1,), (1,)), ((), ())),
                            preferred_element_type=jnp.float32)
        s = s + mask_b

        hs = slice(h, h + 1)
        m_prev = m_sc[:, hs]                                    # (tq, 1)
        m_new = jnp.maximum(m_prev, jnp.max(s, axis=-1, keepdims=True))
        alpha = jnp.exp(m_prev - m_new)                         # (tq, 1)
        p = jnp.exp(s - m_new)                                  # (tq, tkv) f32 softmax math

        l_sc[:, hs] = alpha * l_sc[:, hs] + jnp.sum(p, axis=-1, keepdims=True)
        m_sc[:, hs] = m_new

        pv = jnp.dot(p.astype(v.dtype), vh,                     # bf16 P @ bf16 V -> f32
                     preferred_element_type=jnp.float32)        # (tq, d_k)
        acc_sc[:, sl] = alpha * acc_sc[:, sl] + pv

    @pl.when(kv == pl.num_programs(2) - 1)
    def _():
        # Normalize once on the (tq, d_k) accumulator slices (not the (tq, Sk) probs),
        # then emit ONE lane-dense (tq, d_model) store (no concat, no per-head stores).
        for h in range(num_heads):
            sl = slice(h * d_k, (h + 1) * d_k)
            inv_l = pl.reciprocal(l_sc[:, h:h + 1], approx=True)
            acc_sc[:, sl] = acc_sc[:, sl] * inv_l
        o_ref[0] = acc_sc[...].astype(o_ref.dtype)


def _attention_call(q_arr, k_arr, v_arr, mask, num_heads, d_model, lane_blocks,
                    out_dtype):
    B, Sq = q_arr.shape[0], q_arr.shape[1]
    Sk = k_arr.shape[1]
    d_k = d_model // num_heads

    tq = _pick_tile(Sq, (256, 128, 64, 32, 16, 8))
    # tkv must be a multiple of 128 (it is the mask block's lane dim) or the full Sk.
    tkv = _pick_tile(Sk, (512, 256, 128))
    # Batch axis outermost so a 2-TC (v7x) split lands on B rather than duplicating K/V.
    grid = (B, Sq // tq, Sk // tkv)

    mask3 = mask[:, None, :]                     # (B, 1, Sk) additive
    qb, kb, vb = lane_blocks                     # lane-block index inside each array
    kernel = functools.partial(_flash_attn_kernel, num_heads=num_heads, d_k=d_k)

    return pl.pallas_call(
        kernel,
        out_shape=jax.ShapeDtypeStruct((B, Sq, d_model), out_dtype),
        grid=grid,
        in_specs=[
            pl.BlockSpec((1, tq, d_model), lambda b, i, kv: (b, i, qb)),
            pl.BlockSpec((1, tkv, d_model), lambda b, i, kv: (b, kv, kb)),
            pl.BlockSpec((1, tkv, d_model), lambda b, i, kv: (b, kv, vb)),
            pl.BlockSpec((1, 1, tkv), lambda b, i, kv: (b, 0, kv)),
        ],
        out_specs=pl.BlockSpec((1, tq, d_model), lambda b, i, kv: (b, i, 0)),
        scratch_shapes=[
            pltpu.VMEM((tq, num_heads), jnp.float32),   # running max per head
            pltpu.VMEM((tq, num_heads), jnp.float32),   # running denominator per head
            pltpu.VMEM((tq, d_model), jnp.float32),     # running P@V accumulator
        ],
        compiler_params=pltpu.CompilerParams(
            dimension_semantics=("parallel", "parallel", "arbitrary"),
            vmem_limit_bytes=_vmem_limit_bytes(),
        ),
    )(q_arr, k_arr, v_arr, mask3)


# ----------------------------------------------------------------------------
# Parameters: raw f32 (PyTorch nn.Linear layout, for the reference) + preprocessed
# kernel weights (transposed, fused, bf16) built ONCE at init time.
# ----------------------------------------------------------------------------
def preprocess_params(raw, compute_dtype=jnp.bfloat16):
    (wq, bq), (wk, bk) = raw["W_q"], raw["W_k"]
    (wv, bv), (wo, bo) = raw["W_v"], raw["W_o"]
    to_c = lambda w: w.T.astype(compute_dtype)          # (d_in, d_out) layout for MXU
    return {
        "wq_t": to_c(wq), "bq": bq,
        "wk_t": to_c(wk), "bk": bk,
        "wv_t": to_c(wv), "bv": bv,
        "wo_t": to_c(wo), "bo": bo,
        "wqkv_t": jnp.concatenate([to_c(wq), to_c(wk), to_c(wv)], axis=1),
        "bqkv": jnp.concatenate([bq, bk, bv]),
    }


def init_params(key, d_model, compute_dtype=jnp.bfloat16):
    ks = jax.random.split(key, 8)
    bound = 1.0 / math.sqrt(d_model)

    def lin(kw, kb):
        w = jax.random.uniform(kw, (d_model, d_model), jnp.float32, -bound, bound)
        b = jax.random.uniform(kb, (d_model,), jnp.float32, -bound, bound)
        return w, b

    raw = {"W_q": lin(ks[0], ks[1]), "W_k": lin(ks[2], ks[3]),
           "W_v": lin(ks[4], ks[5]), "W_o": lin(ks[6], ks[7])}
    return raw, preprocess_params(raw, compute_dtype)


# ----------------------------------------------------------------------------
# MultiHeadAttention forward (glue in plain JAX, hot paths in Pallas kernels)
# ----------------------------------------------------------------------------
def multi_head_attention(pre, Q, K, V, mask, num_heads):
    B, Sq, d_model = Q.shape
    Sk = K.shape[1]
    cdt = pre["wqkv_t"].dtype            # compute dtype (bf16)

    if mask is None:
        mask = jnp.zeros((B, Sk), jnp.float32)
    mask = mask.astype(jnp.float32)

    def project(x, wt, b):
        b_, s_, d_ = x.shape
        y = linear(x.reshape(b_ * s_, d_).astype(cdt), wt, b, out_dtype=cdt)
        return y.reshape(b_, s_, -1)

    # NOTE: fusion keys off object identity (works for plain self-attention calls;
    # equal-but-distinct arrays fall back to the still-correct un-fused path).
    if Q is K and K is V:
        qkv = project(Q, pre["wqkv_t"], pre["bqkv"])            # (B, S, 3*d_model)
        if d_model % 128 == 0:
            # Attention reads q/k/v straight out of the fused buffer via BlockSpec
            # lane-block indexing -- no slicing copies.
            attn = _attention_call(qkv, qkv, qkv, mask, num_heads, d_model,
                                   lane_blocks=(0, 1, 2), out_dtype=cdt)
        else:
            q = qkv[..., :d_model]
            k = qkv[..., d_model:2 * d_model]
            v = qkv[..., 2 * d_model:]
            attn = _attention_call(q, k, v, mask, num_heads, d_model,
                                   lane_blocks=(0, 0, 0), out_dtype=cdt)
    else:
        q = project(Q, pre["wq_t"], pre["bq"])
        k = project(K, pre["wk_t"], pre["bk"])
        v = project(V, pre["wv_t"], pre["bv"])
        attn = _attention_call(q, k, v, mask, num_heads, d_model,
                               lane_blocks=(0, 0, 0), out_dtype=cdt)

    # attn is already (B, S, d_model): no combine_heads transpose needed.
    out = linear(attn.reshape(B * Sq, d_model), pre["wo_t"], pre["bo"],
                 out_dtype=jnp.float32)
    return out.reshape(B, Sq, d_model)


# ----------------------------------------------------------------------------
# Pure-JAX f32 reference (mirrors the PyTorch forward) for verification
# ----------------------------------------------------------------------------
def reference_mha(raw, Q, K, V, mask, num_heads):
    B, Sq, d_model = Q.shape
    d_k = d_model // num_heads

    def lin(x, wb):
        w, b = wb
        return x @ w.T + b

    def split(x):
        return x.reshape(B, x.shape[1], num_heads, d_k).transpose(0, 2, 1, 3)

    q = split(lin(Q, raw["W_q"]))
    k = split(lin(K, raw["W_k"]))
    v = split(lin(V, raw["W_v"]))
    scores = jnp.einsum("bhqd,bhkd->bhqk", q, k) / math.sqrt(d_k)
    if mask is not None:
        scores = scores + mask[:, None, None, :]
    probs = jax.nn.softmax(scores, axis=-1)
    out = jnp.einsum("bhqk,bhkd->bhqd", probs, v)
    out = out.transpose(0, 2, 1, 3).reshape(B, Sq, d_model)
    return lin(out, raw["W_o"])


if __name__ == "__main__":
    B, S, d_model, num_heads = 2, 8, 128, 4

    key = jax.random.PRNGKey(0)
    kp, kx, ky = jax.random.split(key, 3)

    raw, pre = init_params(kp, d_model)
    x = jax.random.normal(kx, (B, S, d_model), jnp.float32)
    y = jax.random.normal(ky, (B, S, d_model), jnp.float32)
    # additive padding-style mask: last two key positions masked out
    mask = jnp.zeros((B, S), jnp.float32).at[:, -2:].set(-1e9)

    # Self-attention call (Q = K = V): fused-QKV + lane-block-indexed flash path.
    out_self = jax.block_until_ready(multi_head_attention(pre, x, x, x, mask, num_heads))
    ref_self = reference_mha(raw, x, x, x, mask, num_heads)
    assert out_self.shape == (B, S, d_model), out_self.shape
    # Tolerance accounts for bf16 MXU operands + approx reciprocal in the softmax.
    assert jnp.allclose(out_self, ref_self, atol=2.5e-2, rtol=2.5e-2), \
        float(jnp.max(jnp.abs(out_self - ref_self)))

    # Cross-attention call exercises the un-fused projection path.
    out_cross = jax.block_until_ready(multi_head_attention(pre, x, y, y, mask, num_heads))
    ref_cross = reference_mha(raw, x, y, y, mask, num_heads)
    assert jnp.allclose(out_cross, ref_cross, atol=2.5e-2, rtol=2.5e-2), \
        float(jnp.max(jnp.abs(out_cross - ref_cross)))

    print("KERNEL_OK")
</pallas_src>

<mosaic_0001>
module attributes {stable_mosaic.version = 11 : i64} {
  func.func @_linear_kernel(%arg0: i32, %arg1: i32, %arg2: i32, %arg3: memref<16x128xbf16, #tpu.memory_space<vmem>>, %arg4: memref<128x128xbf16, #tpu.memory_space<vmem>>, %arg5: memref<1x128xf32, #tpu.memory_space<vmem>>, %arg6: memref<16x128xbf16, #tpu.memory_space<vmem>>, %arg7: memref<16x128xf32, #tpu.memory_space<vmem>>) attributes {dimension_semantics = [#tpu.dimension_semantics<parallel>, #tpu.dimension_semantics<parallel>, #tpu.dimension_semantics<arbitrary>], iteration_bounds = array<i64: 1, 3, 1>, scalar_prefetch = 0 : i64, scratch_operands = 1 : i64, tpu.core_type = #tpu.core_type<tc>, window_params = [{transform_indices = @transform_0, window_bounds = array<i64: 16, 128>}, {transform_indices = @transform_1, window_bounds = array<i64: 128, 128>}, {transform_indices = @transform_2, window_bounds = array<i64: 1, 128>}, {transform_indices = @transform_3, window_bounds = array<i64: 16, 128>}]} {
    %c0_i32 = arith.constant 0 : i32
    %0 = arith.cmpi eq, %arg2, %c0_i32 : i32
    %1 = arith.extui %0 : i1 to i32
    %c0_i32_0 = arith.constant 0 : i32
    %2 = arith.cmpi ne, %1, %c0_i32_0 : i32
    scf.if %2 {
      %cst_10 = arith.constant 0.000000e+00 : f32
      %12 = vector.broadcast %cst_10 : f32 to vector<16x128xf32>
      %c0_11 = arith.constant 0 : index
      %c0_12 = arith.constant 0 : index
      %13 = vector.load %arg7[%c0_11, %c0_12] : memref<16x128xf32, #tpu.memory_space<vmem>>, vector<16x128xf32>
      tpu.vector_store %arg7[%c0_11, %c0_12], %12 {strides = array<i32>} : memref<16x128xf32, #tpu.memory_space<vmem>>, vector<16x128xf32>,
    } else {
    }
    %c0 = arith.constant 0 : index
    %c0_1 = arith.constant 0 : index
    %3 = vector.load %arg7[%c0, %c0_1] : memref<16x128xf32, #tpu.memory_space<vmem>>, vector<16x128xf32>
    %c0_2 = arith.constant 0 : index
    %c0_3 = arith.constant 0 : index
    %4 = vector.load %arg3[%c0_2, %c0_3] : memref<16x128xbf16, #tpu.memory_space<vmem>>, vector<16x128xbf16>
    %c0_4 = arith.constant 0 : index
    %c0_5 = arith.constant 0 : index
    %5 = vector.load %arg4[%c0_4, %c0_5] : memref<128x128xbf16, #tpu.memory_space<vmem>>, vector<128x128xbf16>
    %cst = arith.constant dense<0.000000e+00> : vector<16x128xf32>
    %6 = tpu.matmul %4, %5, %cst {dimension_numbers = #tpu.dot_dimension_numbers<[1], [0], [0], [1], [0, 0, 1, 1], [], []>} : vector<16x128xbf16>, vector<128x128xbf16>, vector<16x128xf32> -> vector<16x128xf32>
    %7 = arith.addf %3, %6 : vector<16x128xf32>
    %c0_6 = arith.constant 0 : index
    %c0_7 = arith.constant 0 : index
    %8 = vector.load %arg7[%c0_6, %c0_7] : memref<16x128xf32, #tpu.memory_space<vmem>>, vector<16x128xf32>
    tpu.vector_store %arg7[%c0_6, %c0_7], %7 {strides = array<i32>} : memref<16x128xf32, #tpu.memory_space<vmem>>, vector<16x128xf32>,
    %c0_i32_8 = arith.constant 0 : i32
    %9 = arith.cmpi eq, %arg2, %c0_i32_8 : i32
    %10 = arith.extui %9 : i1 to i32
    %c0_i32_9 = arith.constant 0 : i32
    %11 = arith.cmpi ne, %10, %c0_i32_9 : i32
    scf.if %11 {
      %c0_10 = arith.constant 0 : index
      %c0_11 = arith.constant 0 : index
      %12 = vector.load %arg7[%c0_10, %c0_11] : memref<16x128xf32, #tpu.memory_space<vmem>>, vector<16x128xf32>
      %c0_12 = arith.constant 0 : index
      %c0_13 = arith.constant 0 : index
      %13 = vector.load %arg5[%c0_12, %c0_13] : memref<1x128xf32, #tpu.memory_space<vmem>>, vector<1x128xf32>
      %14 = vector.broadcast %13 : vector<1x128xf32> to vector<16x128xf32>
      %15 = arith.addf %12, %14 : vector<16x128xf32>
      %16 = arith.truncf %15 : vector<16x128xf32> to vector<16x128xbf16>
      %c0_14 = arith.constant 0 : index
      %c0_15 = arith.constant 0 : index
      %17 = vector.load %arg6[%c0_14, %c0_15] : memref<16x128xbf16, #tpu.memory_space<vmem>>, vector<16x128xbf16>
      tpu.vector_store %arg6[%c0_14, %c0_15], %16 {strides = array<i32>} : memref<16x128xbf16, #tpu.memory_space<vmem>>, vector<16x128xbf16>,
    } else {
    }
    return
  }
  func.func @transform_0(%arg0: i32, %arg1: i32, %arg2: i32) -> (i32, i32) {
    %c0_i32 = arith.constant 0 : i32
    return %arg0, %arg2 : i32, i32
  }
  func.func @transform_1(%arg0: i32, %arg1: i32, %arg2: i32) -> (i32, i32) {
    %c0_i32 = arith.constant 0 : i32
    return %arg2, %arg1 : i32, i32
  }
  func.func @transform_2(%arg0: i32, %arg1: i32, %arg2: i32) -> (i32, i32) {
    %c0_i32 = arith.constant 0 : i32
    %c0_i32_0 = arith.constant 0 : i32
    return %c0_i32, %arg1 : i32, i32
  }
  func.func @transform_3(%arg0: i32, %arg1: i32, %arg2: i32) -> (i32, i32) {
    %c0_i32 = arith.constant 0 : i32
    return %arg0, %arg1 : i32, i32
  }
}

</mosaic_0001>

<bundles_post_ra>
// kernel: tpu_custom_call.1
= control target key start
LH: loop header
LB: loop body
LE: loop exit
PB: predicated region body
PF: predicated region fallthrough
CT: control target
= control target key end

     0   :  { %8 = vsyncpa [#allocation4], 0  ;;  %s1088_s0 = inlined_call_operand.hbm [shape: bf16[16,128], index: 0, kind: input, shape index: {}]   ;;  %s1089_s1 = inlined_call_operand.hbm [shape: bf16[128,384], index: 1, kind: input, shape index: {}]   ;;  %s1090_s2 = inlined_call_operand.vmem [shape: f32[1,384], index: 2, kind: input, shape index: {}]   ;;  %s1091_s3 = inlined_call_operand.hbm [shape: bf16[16,384], index: 3, kind: output, shape index: {}]  }
   0x1   :  { %9 = vsyncpa [#allocation7], 0 }
   0x2   :  { %11 = vsyncpa [#allocation7 + $0x1], 0 }
   0x3   :  { %12 = vsyncpa [#allocation5], 0 }
   0x4   :  { %14 = vsyncpa [#allocation5 + $0x1], 0  ;;  %s866_s12 = smov 0   ;;  %s868_s13 = smov 0  }
   0x5   :  { %s870_s14 = smov 0   ;;  %s872_s15 = smov 0  }
   0x6   :  { %s874_s16 = smov 0   ;;  %s876_s17 = smov 0  }
   0x7 LB: > { %s536_s18 = sadd.s32 4294967295, %s833_s17   ;;  %s537_s19 = sadd.s32 4294967294, %s833_s17   ;;  %s833_s17 = sphi %s876_s17, %s20_s17   ;;  %s829_s16 = sphi %s874_s16, %s1118_s16   ;;  %s825_s15 = sphi %s872_s15, %s1117_s15   ;;  %s821_s14 = sphi %s870_s14, %s1116_s14   ;;  %s817_s13 = sphi %s868_s13, %s1115_s13   ;;  %s813_s12 = sphi %s866_s12, %s1114_s12  }
   0x8   : > { %p83_p0 = scmp.ne.s32.totalorder %s821_s14, %s817_s13  ;;  %p84_p1 = scmp.eq.s32.totalorder %s833_s17, 0 }
   0x9   : > { %p89_p2 = scmp.ne.s32.totalorder %s817_s13, %s813_s12  ;;  %p903_p3 = scmp.eq.s32.totalorder %s536_s18, 0 }
   0xa   : > { %p907_p4 = por %p84_p1, %p83_p0  ;;  %p141_p5 = scmp.eq.s32.totalorder %s536_s18, 2 }
   0xb   : > { %s1099_s20 = scalar_select %p903_p3, 1, 0 }
   0xc   : > { %p913_p6 = por %p903_p3, %p89_p2  ;;  %p147_p7 = scmp.eq.s32.totalorder %s537_s19, 2 }
   0xd   : > { %p917_p8 = por %p141_p5, %p83_p0  ;;  %p538_p9 = scmp.ge.s32.totalorder %s833_s17, 1 }
   0xe   : > { %s1101_s22 = scalar_select %p913_p6, 1, 0 }
   0xf   : > { %s1102_s23 = scalar_select %p917_p8, 1, 0 }
  0x10   : > { %p922_p10 = por %p147_p7, %p89_p2  ;;  %p154_p11 = scmp.lt.s32.totalorder %s833_s17, 4 }
  0x11   : > { %s835_s26 = smov [#allocation3]   ;;  %p620_p0 = scmp.lt.s32.totalorder %s833_s17, 3 }
  0x12   : > { %s1103_s24 = scalar_select %p922_p10, 1, 0 }
  0x13   : > { %p927_p12 = pnand %p538_p9, %p154_p11  ;;  %s170_s27 = sshll.u32 %s835_s26, 4  ;;  %s171_s27 = int_to_ptr.vmem [resolvable:$true] %s170_s27 }
  0x14   : > { %p942_p2 = pnand %p620_p0, %p907_p4  ;;  %s35_s30 = sadd.s32 1, %s829_s16 }
  0x15   : > { %s1104_s25 = scalar_select %p927_p12, 1, 0 }
  0x16   : > { %p607_p13 = pneg %p927_p12  ;;  %s689_s6 = scalar_lea.hbm %s1088_s0, 128 }
  0x17   : > { %s1106_s29 = scalar_select %p942_p2, 1, 0 }
  0x18   : > { %p936_p1 = pnand %p607_p13, %p903_p3  ;;  %p690_p5 = scmp.ne.s32.totalorder %s1088_s0, %s689_s6 }
  0x19   : > { %p696_p4 = scmp.lt.u32.totalorder %s689_s6, %s1088_s0 }
  0x1a   : > { %p691_p7 = pneg %p936_p1 }
  0x1c   : > { %p692_p9 = pnand %p691_p7, %p690_p5 }
  0x1e   : > { %p693_p11 = pneg %p692_p9 }
  0x20   : > { %p698_p13 = pnand %p696_p4, %p693_p11 }
  0x22   : > { %701 = shalt.err (!%p698_p13)
}
  0x23   : > { %s702_s11 = scalar_lea.vmem %s171_s27, 128  ;;  %p710_p6 = scmp.lt.s32.totalorder %s171_s27, %s171_s27 }
  0x24   : > { %p703_p0 = scmp.ne.s32.totalorder %s171_s27, %s702_s11  ;;  %p711_p3 = scmp.lt.s32.totalorder %s702_s11, %s702_s11 }
  0x26   : > { %p705_p10 = pnand %p703_p0, %p691_p7  ;;  %p712_p12 = por %p711_p3, %p710_p6 }
  0x28   : > { %p706_p8 = pneg %p705_p10 }
  0x2a   : > { %p713_p2 = pnand %p712_p12, %p706_p8 }
  0x2c   : > { %716 = shalt.err (!%p713_p2)
}
  0x2d   : > { %s1098_s18 = smov 64   ;;  %s837_s19 = smov 4  }
  0x2e   : > { %610 = dma.hbm_to_vmem [thread:$0]  (!%p936_p1), %s1088_s0, 128, %s171_s27, [#allocation4], %s1098_s18, %s1098_s18, %s837_s19  }
  0x2f   : > { %p37_p10 = scmp.ge.s32.totalorder %s35_s30, 3  ;;  %s76_s4 = sadd.s32 1, %s821_s14 }
  0x30   : > { %s184_s5 = sand.u32 1, %s821_s14   ;;  %s542_s8 = sshll.u32 %s829_s16, 6 }
  0x31   : > { %s1120_s30 = smov (%p37_p10, %s35_s30), 0  ;;  %s541_s6 = sshll.u32 %s184_s5, 6 }
  0x32   : > { %s72_s7 = ssub.s32 %s829_s16, %s1120_s30  ;;  %s976_s10 = scalar_lea.hbm %s1089_s1, %s542_s8 }
  0x33   : > { %p74_p3 = scmp.eq.s32.totalorder %s72_s7, 0  ;;  %s188_s27 = scalar_lea.vmem [#allocation6], %s541_s6 }
  0x34   : > { %s197_s11 = sshll.u32 %s188_s27, 4  ;;  %s983_s26 = scalar_lea.sflag [#allocation7], %s184_s5  ;;  %s981_s11 = int_to_ptr.vmem [resolvable:$true] %s197_s11 }
  0x35   : > { %s979_s21 = scalar_select %p74_p3, %s821_s14, %s76_s4  }
  0x36   : > { %s717_s18 = scalar_lea.hbm %s976_s10, 1024  ;;  %p1107_p8 = scmp.ne.s32.totalorder %s1106_s29, 0 }
  0x37   : > { %p718_p6 = scmp.ne.s32.totalorder %s976_s10, %s717_s18  ;;  %s722_s28 = scalar_lea.hbm %s1089_s1, 3072 }
  0x38   : > { %p719_p12 = pneg %p1107_p8  ;;  %p723_p5 = scmp.lt.u32.totalorder %s976_s10, %s1089_s1 }
  0x39   : > { %p724_p7 = scmp.lt.u32.totalorder %s722_s28, %s717_s18  ;;  %p726_p11 = scmp.lt.u32.totalorder %s717_s18, %s976_s10 }
  0x3a   : > { %p720_p1 = pnand %p719_p12, %p718_p6 }
  0x3b   : > { %p725_p9 = por %p724_p7, %p723_p5 }
  0x3c   : > { %p721_p2 = pneg %p720_p1 }
  0x3d   : > { %p727_p4 = por %p726_p11, %p725_p9 }
  0x3f   : > { %p728_p13 = pnand %p727_p4, %p721_p2 }
  0x41   : > { %731 = shalt.err (!%p728_p13)
}
  0x42   : > { %s732_s4 = scalar_lea.vmem %s981_s11, 1024  ;;  %s838_s5 = smov [#allocation6]  }
  0x43   : > { %p733_p0 = scmp.ne.s32.totalorder %s981_s11, %s732_s4  ;;  %s737_s27 = sshll.u32 %s838_s5, 4  ;;  %s738_s27 = int_to_ptr.vmem [resolvable:$false] %s737_s27 }
  0x44   : > { %s739_s7 = scalar_lea.vmem %s738_s27, 2048  ;;  %p740_p6 = scmp.lt.s32.totalorder %s981_s11, %s738_s27 }
  0x45   : > { %p735_p10 = pnand %p733_p0, %p719_p12  ;;  %p741_p1 = scmp.lt.s32.totalorder %s739_s7, %s732_s4 }
  0x47   : > { %p736_p3 = pneg %p735_p10  ;;  %p742_p5 = por %p741_p1, %p740_p6 }
  0x49   : > { %p743_p7 = pnand %p742_p5, %p736_p3 }
  0x4b   : > { %746 = shalt.err (!%p743_p7)
}
  0x4c   : > { %s839_s18 = smov 192   ;;  %s1108_s8 = smov 64  }
  0x4d   : > { %614 = dma.hbm_to_vmem [thread:$0]  (!%p1107_p8), %s976_s10, 1024, %s981_s11, %s983_s26, %s839_s18, %s1108_s8, %s837_s19  }
  0x4e   : > { %p1109_p12 = scmp.ne.s32.totalorder %s1104_s25, 0 }
  0x4f   : > { %p1110_p2 = scmp.ne.s32.totalorder (!%p1109_p12), %s1099_s20, 0 }
  0x50   : > { %215 = sbr.rel (%p1109_p12) target bundleno = 359 (0x167), region = 32 }
  0x57   : > { %800 = dma.done.wait (%p1110_p2), [#allocation4], 128  }
  0x58   : > { %802 = vsyncadd (%p1110_p2), [#allocation4], 4294967168  ;;  %s1020_s28 = sand.u32 1, %s817_s13   ;;  %p1111_p9 = scmp.ne.s32.totalorder %s1101_s22, 0 }
  0x59   : > { %s545_s29 = sshll.u32 %s1020_s28, 6  ;;  %s222_s6 = scalar_lea.sflag [#allocation7], %s1020_s28 }
  0x5a   : > { %s225_s9 = scalar_lea.vmem [#allocation6], %s545_s29 }
  0x5b   : > { %804 = dma.done.wait (%p1111_p9), %s222_s6, 1024  }
  0x5c   : > { %806 = vsyncadd (%p1111_p9), %s222_s6, 4294966272  ;;  %v840_v0 = vmov 0.0   ;;  %vm841_vm0 = vmmov 0   ;;  %v680_v1 = vld [vmem:[%s225_s9] sm:$0xff]   ;;  %v681_v2 = vld [vmem:[%s225_s9 + $0x8] sm:$0xff]   ;;  %p253_p8 = scmp.lt.s32.totalorder %s825_s15, 2 }
  0x5d   : > { %579 = vmatprep.subr.bf16.mxu0 %v840_v0  ;;  %595 = vmatprep.mubr.msk.bf16.mxu0 %vm841_vm0, %v840_v0  ;;  %v682_v3 = vld [vmem:[%s225_s9 + $0x10] sm:$0xff]   ;;  %v683_v4 = vld [vmem:[%s225_s9 + $0x18] sm:$0xff]   ;;  %v684_v5 = vld [vmem:[%s225_s9 + $0x20] sm:$0xff]   ;;  %s546_s22 = sshll.u32 %s1020_s28, 3  ;;  %s560_s4 = sshll.u32 %s825_s15, 6 }
  0x5e   : > { %580 = vmatpush3.bf16.msra.mxu0 %v680_v1  ;;  %v685_v6 = vld [vmem:[%s225_s9 + $0x28] sm:$0xff]   ;;  %v686_v7 = vld [vmem:[%s225_s9 + $0x30] sm:$0xff]   ;;  %v687_v8 = vld [vmem:[%s225_s9 + $0x38] sm:$0xff]   ;;  %s254_s20 = scalar_select %p253_p8, %s825_s15, 2 }
  0x5f   : > { %581 = vmatprep.subr.bf16.mxu0 %v840_v0  ;;  %v688_v9 = vld [vmem:[#allocation3] sm:$0xff]   ;;  %s250_s11 = scalar_lea.vmem [#allocation8], %s546_s22  ;;  %s1040_s7 = scalar_lea.hbm %s1091_s3, %s560_s4 }
  0x60   : > { %s255_s10 = scalar_lea.vmem %s1090_s2, %s254_s20  ;;  %s423_s26 = sshll.u32 %s250_s11, 4  ;;  %s1035_s26 = int_to_ptr.vmem [resolvable:$true] %s423_s26 }
  0x61   : > { %v556_v11 = vld [vmem:[%s255_s10] ss:$0 sm:$0xff]  ;;  %s408_s18 = scalar_lea.sflag [#allocation5], %s1020_s28  ;;  %s747_s8 = scalar_lea.vmem %s1035_s26, 128 }
  0x62   : > { %582 = vmatpush3.bf16.msra.mxu0 %v681_v2  ;;  %p748_p11 = scmp.ne.s32.totalorder %s1035_s26, %s747_s8  ;;  %p1112_p4 = scmp.ne.s32.totalorder %s1102_s23, 0 }
  0x63   : > { %583 = vmatprep.subr.bf16.mxu0 %v840_v0  ;;  %s842_s15 = smov [#allocation8]  }
  0x64   : > { %p749_p13 = pnand %p748_p11, %p1112_p4  ;;  %s751_s29 = sshll.u32 %s842_s15, 4  ;;  %s752_s29 = int_to_ptr.vmem [resolvable:$false] %s751_s29 }
  0x65   : > { %s753_s6 = scalar_lea.vmem %s752_s29, 256  ;;  %p754_p10 = scmp.lt.s32.totalorder %s1035_s26, %s752_s29 }
  0x66   : > { %584 = vmatpush3.bf16.msra.mxu0 %v682_v3  ;;  %p750_p0 = pneg %p749_p13  ;;  %p755_p3 = scmp.lt.s32.totalorder %s753_s6, %s747_s8 }
  0x67   : > { %585 = vmatprep.subr.bf16.mxu0 %v840_v0 }
  0x68   : > { %p756_p6 = por %p755_p3, %p754_p10 }
  0x6a   : > { %586 = vmatpush3.bf16.msra.mxu0 %v683_v4  ;;  %p757_p1 = pnand %p756_p6, %p750_p0 }
  0x6b   : > { %587 = vmatprep.subr.bf16.mxu0 %v840_v0 }
  0x6e   : > { %588 = vmatpush3.bf16.msra.mxu0 %v684_v5 }
  0x6f   : > { %589 = vmatprep.subr.bf16.mxu0 %v840_v0 }
  0x72   : > { %590 = vmatpush3.bf16.msra.mxu0 %v685_v6 }
  0x73   : > { %591 = vmatprep.subr.bf16.mxu0 %v840_v0 }
  0x76   : > { %592 = vmatpush3.bf16.msra.mxu0 %v686_v7 }
  0x77   : > { %593 = vmatprep.subr.bf16.mxu0 %v840_v0 }
  0x7a   : > { %594 = vmatpush3.bf16.msra.mxu0 %v687_v8 }
  0x7d   : > { %596 = vmatmul.mubr.bf16.vlgmr.msra.gmra.mrb[0].mxu0 %v688_v9 }
 0x150   : > { %v372_v10 = vpop.f32.mrb[0].mxu0 }
 0x151   : > { %v597_v12 = vpop.f32.mrb[1].mxu0  ;;  %v395_v14 = vadd.f32 %v556_v11, %v372_v10 }
 0x152   : > { %v375_v13 = vpop.f32.mrb[2].mxu0 }
 0x153   : > { %v396_v15 = vadd.f32 %v556_v11, %v375_v13  ;;  %v598_v16 = vpop.f32.mrb[3].mxu0 }
 0x155   : > { %v568_v17 = vpack.c.bf16 %v396_v15, %v395_v14 }
 0x157   : > { %569 = vst [vmem:[%s250_s11] sm:$0xff] %v568_v17  }
 0x158   : > { %760 = shalt.err (!%p757_p1)
}
 0x159   : > { %s761_s9 = scalar_lea.hbm %s1040_s7, 128  ;;  %s765_s25 = scalar_lea.hbm %s1091_s3, 384 }
 0x15a   : > { %p762_p5 = scmp.ne.s32.totalorder %s1040_s7, %s761_s9  ;;  %p766_p2 = scmp.lt.u32.totalorder %s1040_s7, %s1091_s3 }
 0x15b   : > { %p767_p9 = scmp.lt.u32.totalorder %s765_s25, %s761_s9  ;;  %p769_p11 = scmp.lt.u32.totalorder %s761_s9, %s1040_s7 }
 0x15c   : > { %p763_p7 = pnand %p762_p5, %p1112_p4 }
 0x15d   : > { %p768_p8 = por %p767_p9, %p766_p2 }
 0x15e   : > { %p764_p12 = pneg %p763_p7 }
 0x15f   : > { %p770_p13 = por %p769_p11, %p768_p8 }
 0x161   : > { %p771_p0 = pnand %p770_p13, %p764_p12 }
 0x163   : > { %774 = shalt.err (!%p771_p0)
}
 0x164   : > { %s843_s11 = smov 64   ;;  %s844_s4 = smov 192  }
 0x165   : > { %s845_s5 = smov 4  }
 0x166   : > { %605 = dma.vmem_to_hbm [thread:$0]  (%p1112_p4), %s1035_s26, 128, %s1040_s7, %s408_s18, %s843_s11, %s844_s4, %s845_s5  }
 0x167 PF: > { %p622_p10 = scmp.ge.s32.totalorder %s833_s17, 2  ;;  %s438_s27 = sand.u32 1, %s813_s12  }
 0x168   : > { %p1113_p3 = scmp.ne.s32.totalorder %s1103_s24, 0  ;;  %s439_s8 = scalar_lea.sflag [#allocation5], %s438_s27 }
 0x16a   : > { %p616_p6 = pnand %p622_p10, %p1113_p3 }
 0x16c   : > { %808 = dma.done.wait (!%p616_p6), %s439_s8, 128  }
 0x16d   : > { %810 = vsyncadd (!%p616_p6), %s439_s8, 4294967168  ;;  %s20_s17 = sadd.s32 1, %s833_s17   ;;  %s1114_s12 = smov %s817_s13 }
 0x16e   : > { %p17_p1 = scmp.ge.s32.totalorder %s20_s17, 5   ;;  %s1115_s13 = smov %s821_s14 }
 0x16f   : > { %s1116_s14 = smov %s979_s21  ;;  %s1117_s15 = smov %s829_s16 }
 0x170   : > { %s1118_s16 = smov %s1120_s30  ;;  %19 = sbr.rel (!%p17_p1) target bundleno = 7 (0x7), region = 94 }
 0x177   :  { %444 = vsyncpa [#allocation4], 1 }
 0x178   :  { %446 = vsyncpa [#allocation4 + $0x1], 1 }
 0x179   :  { %447 = vsyncpa [#allocation7], 1 }
 0x17a   :  { %449 = vsyncpa [#allocation7 + $0x1], 1 }
 0x17b   :  { %450 = vsyncpa [#allocation5], 1 }
 0x17c   :  { %452 = vsyncpa [#allocation5 + $0x1], 1 }

</bundles_post_ra>
